<compile_context>
chip_gen: v6e
topology: v6e:2x2x1
jax: 0.10.0
libtpu: 0.0.40
codegen_flags: <defaults>
</compile_context>

<pallas_src>
import functools
import math

import jax
import jax.numpy as jnp
import numpy as np
from jax import lax
from jax.experimental import pallas as pl
from jax.experimental.pallas import tpu as pltpu


def _round_up(x, m):
    return ((x + m - 1) // m) * m


_VMEM_LIMIT = 40 * 1024 * 1024      # fits v7x's 64 MiB physical VMEM with headroom
_TILE_BUDGET = 26 * 1024 * 1024     # what _choose_tm lets the pipelined tiles use


# ----------------------------------------------------------------------------
# 1. Projection kernel: (tm, K) @ (K, E) + bias, f32 accumulate, bf16 out.
#    Used by the primary (XLA-im2col) path.  Stores are lane-dense whenever E
#    is a multiple of 128, which the wrapper guarantees via token packing.
# ----------------------------------------------------------------------------
def _proj_kernel(p_ref, w_ref, b_ref, o_ref):
    acc = jnp.dot(p_ref[...], w_ref[...], preferred_element_type=jnp.float32)
    o_ref[...] = (acc + b_ref[...]).astype(o_ref.dtype)


def _choose_tm(M, in_row_bytes, out_row_bytes, resident_bytes,
               budget=_TILE_BUDGET, max_tm=2048):
    """Rows per grid step.

    * at least min(4, M // 8) grid steps so v7x's two TensorCores both get
      work and the BlockSpec pipeline has depth (fixes the old tm=M/grid=1
      degenerate case),
    * as many rows as the VMEM budget allows up to 2048 (v6e/v5e: big tiles
      amortize the ~0.35 us/step grid overhead),
    * always a multiple of 8 (sublane tiling), so the padded-M path never
      violates the (8, 128) BlockSpec constraint.
    """
    min_steps = min(4, max(1, M // 8))
    tm = max(8, _round_up(pl.cdiv(M, min_steps), 8))
    tm = min(tm, max_tm)
    per_row = 2 * (in_row_bytes + out_row_bytes)     # double-buffered in + out
    while tm > 8 and resident_bytes + tm * per_row > budget:
        tm = max(8, _round_up(tm // 2, 8))
    return tm


def patch_proj(patches, w, bias, *, out_dtype=jnp.bfloat16):
    """patches: (M, K) bf16; w: (K, E) bf16; bias: (1, E) f32 -> (M, E) out_dtype."""
    M, K = patches.shape
    _K, E = w.shape
    assert _K == K
    out_itemsize = np.dtype(out_dtype).itemsize
    resident = 2 * w.size * w.dtype.itemsize + bias.size * bias.dtype.itemsize
    tm = _choose_tm(M, K * patches.dtype.itemsize, E * out_itemsize, resident)
    assert tm % 8 == 0
    grid = pl.cdiv(M, tm)
    Mp = grid * tm
    if Mp != M:                                  # tail handling: pad, then slice
        patches = jnp.pad(patches, ((0, Mp - M), (0, 0)))

    cost = pl.CostEstimate(
        flops=2 * Mp * K * E,
        transcendentals=0,
        bytes_accessed=(Mp * K * patches.dtype.itemsize
                        + w.size * w.dtype.itemsize
                        + bias.size * bias.dtype.itemsize
                        + Mp * E * out_itemsize),
    )
    out = pl.pallas_call(
        _proj_kernel,
        out_shape=jax.ShapeDtypeStruct((Mp, E), out_dtype),
        grid_spec=pltpu.PrefetchScalarGridSpec(
            num_scalar_prefetch=0,
            grid=(grid,),
            in_specs=[
                pl.BlockSpec((tm, K), lambda i: (i, 0)),
                pl.BlockSpec((K, E), lambda i: (0, 0)),   # weight, resident
                pl.BlockSpec((1, E), lambda i: (0, 0)),   # bias, resident
            ],
            out_specs=pl.BlockSpec((tm, E), lambda i: (i, 0)),
        ),
        compiler_params=pltpu.CompilerParams(
            dimension_semantics=("parallel",),
            vmem_limit_bytes=_VMEM_LIMIT,
        ),
        cost_estimate=cost,
    )(patches, w, bias)
    return out[:M] if Mp != M else out


# ----------------------------------------------------------------------------
# 2. Fused kernel (production shapes only): in-kernel im2col, one frame-pair
#    per grid step, operand assembled in registers (no masked scratch stores),
#    single MXU matmul + bias, one lane-dense output store per step.
# ----------------------------------------------------------------------------
def _fused_kernel(x_ref, w_ref, b_ref, o_ref, *, C, pt, ph, pw, Hp, Wp):
    """x_ref: (1, pt, C, H, W) raw input; w_ref: (K, E) bf16; b_ref: (1, E) f32;
    o_ref: (1, Hp*Wp, E).  Column order (c, dt, dh, dw) matches the flattened
    Conv3d weight built in PatchEmbed.__init__."""
    HpWp = Hp * Wp
    cols = []
    # TODO(synk): at production scale this unrolls C*pt*ph (~96) strided loads;
    # if compile time / vreg pressure bites, switch to per-(c,dt) partial
    # matmuls inside a lax.fori_loop, or move the dh-strided gather onto the
    # DMA engine (pl.ANY input + make_async_copy into a double-buffered p_ref).
    for c in range(C):
        for dt in range(pt):
            for dh in range(ph):
                v = x_ref[0, dt, c, pl.ds(dh, Hp, stride=ph), :]      # (Hp, W)
                cols.append(v.reshape(HpWp, pw))                      # (HpWp, pw)
    p = jnp.concatenate(cols, axis=1).astype(w_ref.dtype)             # (HpWp, K)
    acc = jnp.dot(p, w_ref[...], preferred_element_type=jnp.float32)
    o_ref[0] = (acc + b_ref[...]).astype(o_ref.dtype)


def patch_embed_fused(x_pairs, w_kE, bias_1E, *, pt, ph, pw,
                      out_dtype=jnp.bfloat16):
    """x_pairs: (N, pt, C, H, W) raw frame-pairs; returns (N, Hp*Wp, E)."""
    N, _pt, C, H, W = x_pairs.shape
    K, E = w_kE.shape
    Hp, Wp = H // ph, W // pw
    HpWp = Hp * Wp
    out_itemsize = np.dtype(out_dtype).itemsize
    kernel = functools.partial(_fused_kernel, C=C, pt=pt, ph=ph, pw=pw,
                               Hp=Hp, Wp=Wp)
    cost = pl.CostEstimate(
        flops=2 * N * HpWp * K * E,
        transcendentals=0,
        bytes_accessed=(x_pairs.size * x_pairs.dtype.itemsize
                        + w_kE.size * w_kE.dtype.itemsize
                        + bias_1E.size * bias_1E.dtype.itemsize
                        + N * HpWp * E * out_itemsize),
    )
    return pl.pallas_call(
        kernel,
        out_shape=jax.ShapeDtypeStruct((N, HpWp, E), out_dtype),
        grid_spec=pltpu.PrefetchScalarGridSpec(
            num_scalar_prefetch=0,
            grid=(N,),
            in_specs=[
                # Raw frame-pair straight from HBM; last two dims are the full
                # (H, W) plane so the DMA reads contiguous slabs.  (For real
                # W=224 the lane padding to 256 is minor; toy W=16 configs are
                # routed to the matmul path instead.)
                pl.BlockSpec((1, pt, C, H, W), lambda i: (i, 0, 0, 0, 0)),
                pl.BlockSpec((K, E), lambda i: (0, 0)),   # weight, resident
                pl.BlockSpec((1, E), lambda i: (0, 0)),   # bias, resident
            ],
            out_specs=pl.BlockSpec((1, HpWp, E), lambda i: (i, 0, 0)),
        ),
        compiler_params=pltpu.CompilerParams(
            dimension_semantics=("parallel",),
            vmem_limit_bytes=_VMEM_LIMIT,
        ),
        cost_estimate=cost,
    )(x_pairs, w_kE, bias_1E)


# ----------------------------------------------------------------------------
# Module wrapper.
# ----------------------------------------------------------------------------
class PatchEmbed:
    """Image-to-patch embedding, tubelet size (2, patch, patch).

    forward(x) with x of shape (B*16, C, H, W) returns (B*8, num_patches, E),
    matching the PyTorch module (Conv3d with kernel == stride == (2, p, p))."""

    def __init__(self, img_size=16, patch_size=4, in_chans=4, embed_dim=32, *,
                 key, out_dtype=jnp.bfloat16):
        self.img_size = (img_size, img_size)
        self.patch_size = (2, patch_size, patch_size)
        self.num_patches = (img_size // patch_size) * (img_size // patch_size)
        self.in_chans = in_chans
        self.embed_dim = embed_dim
        self.out_dtype = out_dtype

        pt, ph, pw = self.patch_size
        K = in_chans * pt * ph * pw
        bound = 1.0 / math.sqrt(K)
        k1, k2 = jax.random.split(key)
        # Conv3d weight layout (E, C, pt, ph, pw), bias (E,)
        self.w = jax.random.uniform(k1, (embed_dim, in_chans, pt, ph, pw),
                                    jnp.float32, -bound, bound)
        self.b = jax.random.uniform(k2, (embed_dim,), jnp.float32, -bound, bound)

        # ---- cached projection operands (no per-call transpose/cast) --------
        # (K, E) with K ordered (c, dt, dh, dw); MUST match the im2col column
        # order used by both kernel paths.
        w_kE = self.w.reshape(embed_dim, K).T
        self._w_kE = w_kE.astype(jnp.bfloat16)
        self._bias_1E = self.b.reshape(1, embed_dim)
        # Lane-dense token packing for E < 128: fold f = 128 // E tokens per
        # matmul row against a block-diagonal (f*K, f*E) weight so the output
        # store is a full 128-lane vst (for real ViViT E=768 this is a no-op).
        if embed_dim < 128 and 128 % embed_dim == 0:
            f = 128 // embed_dim
        else:
            f = 1
        self._pack = f
        if f > 1:
            wp = jnp.zeros((f * K, f * embed_dim), jnp.float32)
            for j in range(f):
                wp = wp.at[j * K:(j + 1) * K,
                           j * embed_dim:(j + 1) * embed_dim].set(w_kE)
            self._w_packed = wp.astype(jnp.bfloat16)
            self._bias_packed = jnp.tile(self._bias_1E, (1, f))
        else:
            self._w_packed = self._w_kE
            self._bias_packed = self._bias_1E

    # -- helpers --------------------------------------------------------------
    def _check(self, x):
        BT, C, H, W = x.shape
        assert H == self.img_size[0] and W == self.img_size[1], (
            f"Input image size ({H}*{W}) doesn't match model "
            f"({self.img_size[0]}*{self.img_size[1]}).")
        assert BT % 16 == 0, "BT must be a multiple of 16 (clip length)."
        assert C == self.in_chans

    # -- dispatch --------------------------------------------------------------
    def forward(self, x):
        # Gate on problem size (review item): the fused in-kernel-im2col path
        # only pays off at production shapes (E a multiple of 128 so its output
        # is lane-dense, and enough tokens per frame-pair to feed the MXU).
        # Small / toy configs go through the XLA-im2col + packed matmul path.
        pt, ph, pw = self.patch_size
        Hp, Wp = self.img_size[0] // ph, self.img_size[1] // pw
        if self.embed_dim % 128 == 0 and Hp * Wp >= 64:
            return self.forward_fused(x)
        return self.forward_matmul(x)

    __call__ = forward

    # -- path 1: XLA im2col + lane-dense Pallas matmul -------------------------
    def forward_matmul(self, x):
        self._check(x)
        BT, C, H, W = x.shape
        pt, ph, pw = self.patch_size
        B = BT // 16
        Tp, Hp, Wp = 16 // pt, H // ph, W // pw
        M = B * Tp * Hp * Wp
        K = C * pt * ph * pw
        # im2col in XLA: tokens ordered (b, t', h, w), columns (c, dt, dh, dw)
        # to match the flattened Conv3d weight cached in __init__.
        xv = x.reshape(B, Tp, pt, C, Hp, ph, Wp, pw)
        xv = xv.transpose(0, 1, 4, 6, 3, 2, 5, 7)
        patches = xv.reshape(M, K).astype(jnp.bfloat16)   # halves patches traffic
        f = self._pack
        if f > 1 and M % f == 0:
            # Free reshape of contiguous rows: f tokens per 128-lane matmul row.
            out = patch_proj(patches.reshape(M // f, f * K),
                             self._w_packed, self._bias_packed,
                             out_dtype=self.out_dtype)
        else:
            out = patch_proj(patches, self._w_kE, self._bias_1E,
                             out_dtype=self.out_dtype)
        return out.reshape(B * Tp, Hp * Wp, self.embed_dim)   # free reshape

    # -- path 2: fused in-kernel im2col (production shapes) --------------------
    def forward_fused(self, x):
        self._check(x)
        BT, C, H, W = x.shape
        pt, ph, pw = self.patch_size
        N = (BT // 16) * (16 // pt)               # frame-pairs, ordered (b, t')
        # Free reshape (split of the contiguous leading dim), no relayout:
        x_pairs = x.reshape(N, pt, C, H, W)
        return patch_embed_fused(x_pairs, self._w_kE, self._bias_1E,
                                 pt=pt, ph=ph, pw=pw, out_dtype=self.out_dtype)


# ----------------------------------------------------------------------------
# Pure-JAX reference replicating the PyTorch forward exactly (for validation).
# ----------------------------------------------------------------------------
def reference(x, w, b, patch_size, num_patches):
    BT, C, H, W = x.shape
    B = BT // 16
    xv = x.reshape(B, 16, C, H, W).transpose(0, 2, 1, 3, 4)  # (B, C, T, H, W)
    y = lax.conv_general_dilated(
        xv, w, window_strides=patch_size, padding="VALID",
        dimension_numbers=("NCDHW", "OIDHW", "NCDHW"))
    y = y + b.reshape(1, -1, 1, 1, 1)
    Bc, E, Tp, Hp, Wp = y.shape
    y = y.reshape(B, E, Tp, Hp * Wp).transpose(0, 2, 1, 3)
    y = y.reshape(BT // 2, E, num_patches).transpose(0, 2, 1)
    return y


if __name__ == "__main__":
    key = jax.random.PRNGKey(0)
    kx, kp = jax.random.split(key)

    # Small shapes: 2 clips x 16 frames, 4 channels, 16x16 images,
    # patch_size=4 (tubelet (2, 4, 4)), embed_dim=32.
    B, C, H, W = 2, 4, 16, 16
    BT = B * 16
    x = jax.random.normal(kx, (BT, C, H, W), jnp.float32)

    mod = PatchEmbed(img_size=16, patch_size=4, in_chans=C, embed_dim=32, key=kp)
    out = jax.block_until_ready(mod.forward(x))
    out = np.asarray(out.astype(jnp.float32))

    ref = np.asarray(reference(x, mod.w, mod.b, mod.patch_size, mod.num_patches))
    assert out.shape == (BT // 2, mod.num_patches, mod.embed_dim), out.shape
    # bf16 operands + bf16 output with K=128 accumulation -> ~1e-2 abs error max.
    err = float(np.max(np.abs(out - ref)))
    assert np.allclose(out, ref, rtol=5e-2, atol=5e-2), f"max abs err {err}"
    print("KERNEL_OK")
</pallas_src>

<mosaic_0001>
module attributes {stable_mosaic.version = 11 : i64} {
  func.func @_proj_kernel(%arg0: i32, %arg1: memref<16x512xbf16, #tpu.memory_space<vmem>>, %arg2: memref<512x128xbf16, #tpu.memory_space<vmem>>, %arg3: memref<1x128xf32, #tpu.memory_space<vmem>>, %arg4: memref<16x128xbf16, #tpu.memory_space<vmem>>) attributes {dimension_semantics = [#tpu.dimension_semantics<parallel>], iteration_bounds = array<i64: 4>, scalar_prefetch = 0 : i64, scratch_operands = 0 : i64, tpu.core_type = #tpu.core_type<tc>, window_params = [{transform_indices = @transform_0, window_bounds = array<i64: 16, 512>}, {pipeline_mode = #tpu.pipeline_mode<synchronous>, transform_indices = @transform_1, window_bounds = array<i64: 512, 128>}, {pipeline_mode = #tpu.pipeline_mode<synchronous>, transform_indices = @transform_2, window_bounds = array<i64: 1, 128>}, {transform_indices = @transform_3, window_bounds = array<i64: 16, 128>}]} {
    %c0 = arith.constant 0 : index
    %c0_0 = arith.constant 0 : index
    %0 = vector.load %arg1[%c0, %c0_0] : memref<16x512xbf16, #tpu.memory_space<vmem>>, vector<16x512xbf16>
    %c0_1 = arith.constant 0 : index
    %c0_2 = arith.constant 0 : index
    %1 = vector.load %arg2[%c0_1, %c0_2] : memref<512x128xbf16, #tpu.memory_space<vmem>>, vector<512x128xbf16>
    %cst = arith.constant dense<0.000000e+00> : vector<16x128xf32>
    %2 = tpu.matmul %0, %1, %cst {dimension_numbers = #tpu.dot_dimension_numbers<[1], [0], [0], [1], [0, 0, 1, 1], [], []>} : vector<16x512xbf16>, vector<512x128xbf16>, vector<16x128xf32> -> vector<16x128xf32>
    %c0_3 = arith.constant 0 : index
    %c0_4 = arith.constant 0 : index
    %3 = vector.load %arg3[%c0_3, %c0_4] : memref<1x128xf32, #tpu.memory_space<vmem>>, vector<1x128xf32>
    %4 = vector.broadcast %3 : vector<1x128xf32> to vector<16x128xf32>
    %5 = arith.addf %2, %4 : vector<16x128xf32>
    %6 = arith.truncf %5 : vector<16x128xf32> to vector<16x128xbf16>
    %c0_5 = arith.constant 0 : index
    %c0_6 = arith.constant 0 : index
    %7 = vector.load %arg4[%c0_5, %c0_6] : memref<16x128xbf16, #tpu.memory_space<vmem>>, vector<16x128xbf16>
    tpu.vector_store %arg4[%c0_5, %c0_6], %6 {strides = array<i32>} : memref<16x128xbf16, #tpu.memory_space<vmem>>, vector<16x128xbf16>,
    return
  }
  func.func @transform_0(%arg0: i32) -> (i32, i32) {
    %c0_i32 = arith.constant 0 : i32
    %c0_i32_0 = arith.constant 0 : i32
    return %arg0, %c0_i32 : i32, i32
  }
  func.func @transform_1(%arg0: i32) -> (i32, i32) {
    %c0_i32 = arith.constant 0 : i32
    %c0_i32_0 = arith.constant 0 : i32
    %c0_i32_1 = arith.constant 0 : i32
    return %c0_i32, %c0_i32_0 : i32, i32
  }
  func.func @transform_2(%arg0: i32) -> (i32, i32) {
    %c0_i32 = arith.constant 0 : i32
    %c0_i32_0 = arith.constant 0 : i32
    %c0_i32_1 = arith.constant 0 : i32
    return %c0_i32, %c0_i32_0 : i32, i32
  }
  func.func @transform_3(%arg0: i32) -> (i32, i32) {
    %c0_i32 = arith.constant 0 : i32
    %c0_i32_0 = arith.constant 0 : i32
    return %arg0, %c0_i32 : i32, i32
  }
}

</mosaic_0001>

<bundles_post_ra>
// kernel: tpu_custom_call.1
= control target key start
LH: loop header
LB: loop body
LE: loop exit
PB: predicated region body
PF: predicated region fallthrough
CT: control target
= control target key end

     0   :  { %8 = vsyncpa [#allocation3], 0  ;;  %s1233_s0 = inlined_call_operand.hbm [shape: bf16[64,512], index: 0, kind: input, shape index: {}]   ;;  %s1234_s1 = inlined_call_operand.hbm [shape: bf16[512,128], index: 1, kind: input, shape index: {}]   ;;  %s1235_s2 = inlined_call_operand.vmem [shape: f32[1,128], index: 2, kind: input, shape index: {}]   ;;  %s1236_s3 = inlined_call_operand.hbm [shape: bf16[64,128], index: 3, kind: output, shape index: {}]  }
   0x1   :  { %10 = vsyncpa [#allocation3 + $0x1], 0 }
   0x2   :  { %11 = vsyncpa [#allocation6], 0 }
   0x3   :  { %12 = vsyncpa [#allocation4], 0 }
   0x4   :  { %14 = vsyncpa [#allocation4 + $0x1], 0  ;;  %s1048_s12 = smov 0   ;;  %s1050_s13 = smov 0  }
   0x5   :  { %s1052_s14 = smov 0   ;;  %s1054_s15 = smov 0  }
   0x6 LB: > { %s1069_s16 = sadd.s32 4294967295, %s1017_s15   ;;  %s684_s17 = sadd.s32 4294967294, %s1017_s15   ;;  %s1017_s15 = sphi %s1054_s15, %s1257_s15   ;;  %s1013_s14 = sphi %s1052_s14, %s1256_s14   ;;  %s1009_s13 = sphi %s1050_s13, %s1255_s13   ;;  %s1005_s12 = sphi %s1048_s12, %s1254_s12  }
   0x7   : > { %p40_p0 = scmp.ne.s32.totalorder %s1009_s13, %s1005_s12  ;;  %p1237_p1 = scmp.eq.s32.totalorder %s1069_s16, 0 }
   0x8   : > { %p112_p3 = scmp.eq.s32.totalorder %s684_s17, 3  ;;  %p685_p5 = scmp.ge.s32.totalorder %s1017_s15, 1 }
   0x9   : > { %p1078_p4 = por %p1237_p1, %p40_p0  ;;  %p119_p7 = scmp.lt.s32.totalorder %s1017_s15, 5 }
   0xa   : > { %p1083_p6 = por %p112_p3, %p40_p0  ;;  %s1019_s21 = smov [#allocation5]  }
   0xb   : > { %s1241_s18 = scalar_select %p1078_p4, 1, 0 }
   0xc   : > { %s1242_s19 = scalar_select %p1083_p6, 1, 0 }
   0xd   : > { %p1088_p8 = pnand %p685_p5, %p119_p7  ;;  %s131_s22 = sshll.u32 %s1019_s21, 4  ;;  %s132_s22 = int_to_ptr.vmem [resolvable:$true] %s131_s22 }
   0xe   : > { %s1101_s24 = sadd.s32 1, %s1017_s15   ;;  %s27_s25 = sadd.s32 1, %s1013_s14 }
   0xf   : > { %s1243_s20 = scalar_select %p1088_p8, 1, 0 }
  0x10   : > { %p802_p9 = pneg %p1088_p8  ;;  %s24_s26 = ssub.s32 %s1017_s15, %s1101_s24 }
  0x11   : > { %s906_s27 = scalar_lea.vmem %s132_s22, 4096  ;;  %p914_p3 = scmp.lt.s32.totalorder %s132_s22, %s132_s22 }
  0x12   : > { %p1096_p10 = pnand %p802_p9, %p1237_p1  ;;  %p907_p12 = scmp.ne.s32.totalorder %s132_s22, %s906_s27 }
  0x13   : > { %p915_p5 = scmp.lt.s32.totalorder %s906_s27, %s906_s27 }
  0x14   : > { %p897_p11 = pneg %p1096_p10 }
  0x15   : > { %p916_p7 = por %p915_p5, %p914_p3 }
  0x16   : > { %p909_p13 = pnand %p907_p12, %p897_p11 }
  0x18   : > { %p910_p0 = pneg %p909_p13 }
  0x1a   : > { %p917_p2 = pnand %p916_p7, %p910_p0 }
  0x1c   : > { %920 = shalt.err (!%p917_p2)
}
  0x1d   : > { %s1020_s28 = smov 64   ;;  %s1021_s29 = smov 4  }
  0x1e   : > { %805 = dma.hbm_to_vmem [thread:$0]  (!%p1096_p10), %s1234_s1, 4096, %s132_s22, [#allocation6], %s1020_s28, %s1020_s28, %s1021_s29  }
  0x1f   : > { %p25_p9 = scmp.eq.s32.totalorder %s24_s26, 0  ;;  %p34_p11 = scmp.ne.s32.totalorder %s1013_s14, %s1009_s13 }
  0x20   : > { %p35_p12 = scmp.eq.s32.totalorder %s1017_s15, 0  ;;  %p815_p2 = scmp.lt.s32.totalorder %s1017_s15, 4 }
  0x21   : > { %s1118_s5 = scalar_select %p25_p9, %s1013_s14, %s27_s25  }
  0x22   : > { %p36_p13 = por %p35_p12, %p34_p11  ;;  %p1245_p0 = scmp.eq.s32.totalorder %s1069_s16, 3 }
  0x23   : > { %s148_s7 = sand.u32 1, %s1013_s14   ;;  %s741_s8 = sshll.u32 %s1017_s15, 9 }
  0x24   : > { %p1122_p3 = por %p1245_p0, %p34_p11  ;;  %s688_s9 = sshll.u32 %s148_s7, 5 }
  0x25   : > { %s1131_s17 = scalar_lea.hbm %s1233_s0, %s741_s8  ;;  %s152_s21 = scalar_lea.vmem [#allocation2], %s688_s9 }
  0x26   : > { %s1246_s6 = scalar_select %p1122_p3, 1, 0 }
  0x27   : > { %s160_s22 = sshll.u32 %s152_s21, 4  ;;  %p1133_p10 = pnand %p815_p2, %p36_p13  ;;  %s1137_s22 = int_to_ptr.vmem [resolvable:$true] %s160_s22 }
  0x28   : > { %s1139_s25 = scalar_lea.sflag [#allocation3], %s148_s7  ;;  %s921_s26 = scalar_lea.hbm %s1131_s17, 512 }
  0x29   : > { %p922_p5 = scmp.ne.s32.totalorder %s1131_s17, %s921_s26  ;;  %p923_p7 = pneg %p1133_p10 }
  0x2a   : > { %s926_s29 = scalar_lea.hbm %s1233_s0, 2048  ;;  %p927_p12 = scmp.lt.s32.totalorder %s1131_s17, %s1233_s0 }
  0x2b   : > { %p924_p9 = pnand %p923_p7, %p922_p5  ;;  %p928_p2 = scmp.lt.s32.totalorder %s926_s29, %s921_s26 }
  0x2d   : > { %p925_p11 = pneg %p924_p9  ;;  %p929_p13 = por %p928_p2, %p927_p12 }
  0x2f   : > { %p930_p0 = pnand %p929_p13, %p925_p11 }
  0x31   : > { %933 = shalt.err (!%p930_p0)
}
  0x32   : > { %s934_s7 = scalar_lea.vmem %s1137_s22, 512  ;;  %s1022_s8 = smov [#allocation2]  }
  0x33   : > { %p935_p1 = scmp.ne.s32.totalorder %s1137_s22, %s934_s7  ;;  %s939_s9 = sshll.u32 %s1022_s8, 4  ;;  %s940_s9 = int_to_ptr.vmem [resolvable:$false] %s939_s9 }
  0x34   : > { %s941_s10 = scalar_lea.vmem %s940_s9, 1024  ;;  %p942_p9 = scmp.lt.s32.totalorder %s1137_s22, %s940_s9 }
  0x35   : > { %p937_p6 = pnand %p935_p1, %p923_p7  ;;  %p943_p3 = scmp.lt.s32.totalorder %s941_s10, %s934_s7 }
  0x37   : > { %p938_p5 = pneg %p937_p6  ;;  %p944_p4 = por %p943_p3, %p942_p9 }
  0x39   : > { %p945_p8 = pnand %p944_p4, %p938_p5 }
  0x3b   : > { %948 = shalt.err (!%p945_p8)
}
  0x3c   : > { %s1023_s11 = smov 256   ;;  %s1024_s21 = smov 16  }
  0x3d   : > { %809 = dma.hbm_to_vmem [thread:$0]  (!%p1133_p10), %s1131_s17, 512, %s1137_s22, %s1139_s25, %s1023_s11, %s1023_s11, %s1024_s21  }
  0x3e   : > { %p1248_p1 = scmp.ne.s32.totalorder %s1243_s20, 0 }
  0x3f   : > { %s1163_s26 = sand.u32 (!%p1248_p1), 1, %s1009_s13   ;;  %p1249_p4 = scmp.ne.s32.totalorder (!%p1248_p1), %s1241_s18, 0 }
  0x40   : > { %172 = sbr.rel (%p1248_p1) target bundleno = 328 (0x148), region = 32  ;;  %s693_s27 = sshll.u32 (!%p1248_p1), %s1163_s26, 5 }
  0x41   : > { %s175_s28 = scalar_lea.sflag (!%p1248_p1), [#allocation3], %s1163_s26  ;;  %s1167_s29 = scalar_lea.vmem (!%p1248_p1), [#allocation2], %s693_s27 }
  0x45   : > { %992 = dma.done.wait (%p1249_p4), %s175_s28, 512  }
  0x46   : > { %994 = vsyncadd (%p1249_p4), %s175_s28, 4294966784  ;;  %p1250_p6 = scmp.eq.s32.totalorder %s1069_s16, 0 }
  0x48   : > { %996 = dma.done.wait (%p1250_p6), [#allocation6], 4096   ;;  %p1251_p8 = pmov %p1250_p6 }
  0x49   : > { %v857_v0 = vld [vmem:[#allocation5 + $0x78] sm:$0xff]   ;;  %v861_v4 = vld [vmem:[#allocation5 + $0x70] sm:$0xff]   ;;  %v865_v8 = vld [vmem:[#allocation5 + $0x68] sm:$0xff]   ;;  %s695_s18 = sshll.u32 %s1163_s26, 3  ;;  %s744_s22 = sshll.u32 %s1069_s16, 7 }
  0x4a   : > { %998 = vsyncadd (%p1251_p8), [#allocation6], 4294963200  ;;  %v858_v1 = vld [vmem:[#allocation5 + $0xf8] sm:$0xff]   ;;  %750 = vmatprep.subr.bf16.mxu0 %v857_v0  ;;  %v862_v5 = vld [vmem:[#allocation5 + $0xf0] sm:$0xff]   ;;  %s204_s23 = scalar_lea.vmem [#allocation7], %s695_s18  ;;  %s1189_s7 = scalar_lea.hbm %s1236_s3, %s744_s22 }
  0x4b   : > { %v859_v2 = vld [vmem:[#allocation5 + $0x38] sm:$0xff]   ;;  %772 = vmatprep.subr.bf16.mxu1 %v858_v1  ;;  %v863_v6 = vld [vmem:[#allocation5 + $0x30] sm:$0xff]   ;;  %v866_v9 = vld [vmem:[#allocation5 + $0xe8] sm:$0xff]   ;;  %s601_s25 = sshll.u32 %s204_s23, 4  ;;  %s588_s8 = scalar_lea.sflag [#allocation4], %s1163_s26  ;;  %s1191_s25 = int_to_ptr.vmem [resolvable:$true] %s601_s25 }
  0x4c   : > { %v860_v3 = vld [vmem:[#allocation5 + $0xb8] sm:$0xff]   ;;  %751 = vmatpush3.bf16.msra.mxu0 %v859_v2  ;;  %v864_v7 = vld [vmem:[#allocation5 + $0xb0] sm:$0xff]   ;;  %v867_v10 = vld [vmem:[#allocation5 + $0x28] sm:$0xff]   ;;  %s949_s9 = scalar_lea.vmem %s1191_s25, 128  ;;  %p1252_p10 = scmp.ne.s32.totalorder %s1246_s6, 0 }
  0x4d   : > { %773 = vmatpush3.bf16.msra.mxu1 %v860_v3  ;;  %752 = vmatprep.subr.bf16.mxu0 %v861_v4  ;;  %v868_v11 = vld [vmem:[#allocation5 + $0xa8] sm:$0xff]   ;;  %v869_v12 = vld [vmem:[#allocation5 + $0x60] sm:$0xff]   ;;  %v873_v16 = vld [vmem:[#allocation5 + $0x58] sm:$0xff]   ;;  %p950_p3 = scmp.ne.s32.totalorder %s1191_s25, %s949_s9  ;;  %s1025_s16 = smov [#allocation7]  }
  0x4e   : > { %774 = vmatprep.subr.bf16.mxu1 %v862_v5  ;;  %v870_v13 = vld [vmem:[#allocation5 + $0xe0] sm:$0xff]   ;;  %v874_v17 = vld [vmem:[#allocation5 + $0xd8] sm:$0xff]   ;;  %v877_v20 = vld [vmem:[#allocation5 + $0x50] sm:$0xff]   ;;  %s953_s10 = sshll.u32 %s1025_s16, 4  ;;  %s954_s10 = int_to_ptr.vmem [resolvable:$false] %s953_s10 }
  0x4f   : > { %v871_v14 = vld [vmem:[#allocation5 + $0x20] sm:$0xff]   ;;  %v875_v18 = vld [vmem:[#allocation5 + $0x18] sm:$0xff]   ;;  %v878_v21 = vld [vmem:[#allocation5 + $0xd0] sm:$0xff]   ;;  %p951_p7 = pnand %p950_p3, %p1252_p10  ;;  %s955_s11 = scalar_lea.vmem %s954_s10, 256 }
  0x50   : > { %753 = vmatpush3.bf16.msra.mxu0 %v863_v6  ;;  %v872_v15 = vld [vmem:[#allocation5 + $0xa0] sm:$0xff]   ;;  %v876_v19 = vld [vmem:[#allocation5 + $0x98] sm:$0xff]   ;;  %v879_v22 = vld [vmem:[#allocation5 + $0x10] sm:$0xff]   ;;  %p956_p12 = scmp.lt.s32.totalorder %s1191_s25, %s954_s10  ;;  %p957_p2 = scmp.lt.s32.totalorder %s955_s11, %s949_s9 }
  0x51   : > { %775 = vmatpush3.bf16.msra.mxu1 %v864_v7  ;;  %754 = vmatprep.subr.bf16.mxu0 %v865_v8  ;;  %v880_v23 = vld [vmem:[#allocation5 + $0x90] sm:$0xff]   ;;  %v881_v24 = vld [vmem:[#allocation5 + $0x48] sm:$0xff]   ;;  %v885_v28 = vld [vmem:[#allocation5 + $0x40] sm:$0xff]   ;;  %p952_p11 = pneg %p951_p7 }
  0x52   : > { %776 = vmatprep.subr.bf16.mxu1 %v866_v9  ;;  %v882_v25 = vld [vmem:[#allocation5 + $0xc8] sm:$0xff]   ;;  %v886_v29 = vld [vmem:[#allocation5 + $0xc0] sm:$0xff]   ;;  %p958_p13 = por %p957_p2, %p956_p12 }
  0x53   : > { %v883_v26 = vld [vmem:[#allocation5 + $0x8] sm:$0xff]   ;;  %v887_v30 = vld [vmem:[#allocation5] sm:$0xff]  }
  0x54   : > { %755 = vmatpush3.bf16.msra.mxu0 %v867_v10  ;;  %v884_v27 = vld [vmem:[#allocation5 + $0x88] sm:$0xff]   ;;  %v888_v31 = vld [vmem:[#allocation5 + $0x80] sm:$0xff]   ;;  %p959_p0 = pnand %p958_p13, %p952_p11 }
  0x55   : > { %777 = vmatpush3.bf16.msra.mxu1 %v868_v11  ;;  %756 = vmatprep.subr.bf16.mxu0 %v869_v12  ;;  %v889_v32 = vld [vmem:[%s1167_s29] ss:$16 sps:$4 sm:$0xff]   ;;  %v891_v33 = vld [vmem:[%s1167_s29 + $0x4] ss:$16 sps:$4 sm:$0xff]   ;;  %v892_v34 = vld [vmem:[%s1167_s29 + $0x8] ss:$16 sps:$4 sm:$0xff]  }
  0x56   : > { %778 = vmatprep.subr.bf16.mxu1 %v870_v13  ;;  %v894_v35 = vld [vmem:[%s1167_s29 + $0xc] ss:$16 sps:$4 sm:$0xff]   ;;  %527 = vmatprep.mubr.bf16.mxu0 %v891_v33  ;;  %v696_v41 = vld [vmem:[%s1235_s2] ss:$0 sm:$0xff] }
  0x57   : > { %568 = vmatprep.mubr.bf16.mxu1 %v894_v35 }
  0x58   : > { %757 = vmatpush3.bf16.msra.mxu0 %v871_v14 }
  0x59   : > { %779 = vmatpush3.bf16.msra.mxu1 %v872_v15  ;;  %758 = vmatprep.subr.bf16.mxu0 %v873_v16 }
  0x5a   : > { %780 = vmatprep.subr.bf16.mxu1 %v874_v17 }
  0x5c   : > { %759 = vmatpush3.bf16.msra.mxu0 %v875_v18 }
  0x5d   : > { %781 = vmatpush3.bf16.msra.mxu1 %v876_v19  ;;  %760 = vmatprep.subr.bf16.mxu0 %v877_v20 }
  0x5e   : > { %782 = vmatprep.subr.bf16.mxu1 %v878_v21 }
  0x60   : > { %761 = vmatpush3.bf16.msra.mxu0 %v879_v22 }
  0x61   : > { %783 = vmatpush3.bf16.msra.mxu1 %v880_v23  ;;  %762 = vmatprep.subr.bf16.mxu0 %v881_v24 }
  0x62   : > { %784 = vmatprep.subr.bf16.mxu1 %v882_v25 }
  0x64   : > { %763 = vmatpush3.bf16.msra.mxu0 %v883_v26 }
  0x65   : > { %785 = vmatpush3.bf16.msra.mxu1 %v884_v27  ;;  %764 = vmatprep.subr.bf16.mxu0 %v885_v28 }
  0x66   : > { %786 = vmatprep.subr.bf16.mxu1 %v886_v29 }
  0x68   : > { %765 = vmatpush3.bf16.msra.mxu0 %v887_v30 }
  0x69   : > { %787 = vmatpush3.bf16.msra.mxu1 %v888_v31 }
  0x6b   : > { %528 = vmatmul.mubr.bf16.vlgmr.msra.gmra.mxu0 %v889_v32 }
  0x6c   : > { %569 = vmatmul.mubr.bf16.vlgmr.msra.gmra.mxu1 %v892_v34 }
 0x12b   : > { %v766_v36 = vpop.f32.mrf.mxu0 }
 0x12c   : > { %v788_v37 = vpop.f32.mrf.mxu1 }
 0x12d   : > { %v767_v38 = vpop.f32.mrf.mxu0 }
 0x12e   : > { %v768_v39 = vadd.f32 %v767_v38, %v766_v36  ;;  %v789_v40 = vpop.f32.mrf.mxu1 }
 0x12f   : > { %v769_v42 = vpop.f32.mrf.mxu0  ;;  %v790_v48 = vadd.f32 %v789_v40, %v788_v37 }
 0x130   : > { %v791_v43 = vpop.f32.mrf.mxu1  ;;  %v530_v45 = vadd.f32 %v768_v39, %v696_v41 }
 0x131   : > { %v770_v44 = vpop.f32.mrf.mxu0 }
 0x132   : > { %v771_v46 = vadd.f32 %v770_v44, %v769_v42  ;;  %v792_v47 = vpop.f32.mrf.mxu1  ;;  %v571_v51 = vadd.f32 %v790_v48, %v530_v45 }
 0x133   : > { %v793_v50 = vadd.f32 %v792_v47, %v791_v43 }
 0x134   : > { %v533_v49 = vadd.f32 %v771_v46, %v696_v41 }
 0x136   : > { %v574_v52 = vadd.f32 %v793_v50, %v533_v49 }
 0x138   : > { %v748_v53 = vpack.c.bf16 %v574_v52, %v571_v51 }
 0x13a   : > { %749 = vst [vmem:[%s204_s23] sm:$0xff] %v748_v53  }
 0x13b   : > { %962 = shalt.err (!%p959_p0)
}
 0x13c   : > { %s963_s21 = scalar_lea.hbm %s1189_s7, 128  ;;  %s967_s29 = scalar_lea.hbm %s1236_s3, 512 }
 0x13d   : > { %p964_p5 = scmp.ne.s32.totalorder %s1189_s7, %s963_s21  ;;  %p968_p4 = scmp.lt.s32.totalorder %s1189_s7, %s1236_s3 }
 0x13e   : > { %p969_p6 = scmp.lt.s32.totalorder %s967_s29, %s963_s21 }
 0x13f   : > { %p965_p9 = pnand %p964_p5, %p1252_p10 }
 0x140   : > { %p970_p8 = por %p969_p6, %p968_p4 }
 0x141   : > { %p966_p1 = pneg %p965_p9 }
 0x143   : > { %p971_p3 = pnand %p970_p8, %p966_p1 }
 0x145   : > { %974 = shalt.err (!%p971_p3)
}
 0x146   : > { %s1026_s17 = smov 64   ;;  %s1027_s22 = smov 4  }
 0x147   : > { %800 = dma.vmem_to_hbm [thread:$0]  (%p1252_p10), %s1191_s25, 128, %s1189_s7, %s588_s8, %s1026_s17, %s1026_s17, %s1027_s22  }
 0x148 PF: > { %p817_p7 = scmp.ge.s32.totalorder %s1017_s15, 2  ;;  %s616_s23 = sand.u32 1, %s1005_s12  }
 0x149   : > { %p1253_p11 = scmp.ne.s32.totalorder %s1242_s19, 0  ;;  %s617_s30 = scalar_lea.sflag [#allocation4], %s616_s23 }
 0x14b   : > { %p811_p12 = pnand %p817_p7, %p1253_p11 }
 0x14d   : > { %p812_p2 = pneg %p811_p12 }
 0x14f   : > { %1000 = dma.done.wait (%p812_p2), %s617_s30, 128  }
 0x150   : > { %1002 = vsyncadd (%p812_p2), %s617_s30, 4294967168  ;;  %p17_p13 = scmp.ge.s32.totalorder %s1101_s24, 6   ;;  %s1254_s12 = smov %s1009_s13 }
 0x151   : > { %s1255_s13 = smov %s1013_s14  ;;  %s1256_s14 = smov %s1118_s5 }
 0x152   : > { %s1257_s15 = smov %s1101_s24  ;;  %19 = sbr.rel (!%p17_p13) target bundleno = 6 (0x6), region = 81 }
 0x157   :  { %622 = vsyncpa [#allocation3], 1 }
 0x158   :  { %624 = vsyncpa [#allocation3 + $0x1], 1 }
 0x159   :  { %625 = vsyncpa [#allocation6], 1 }
 0x15a   :  { %626 = vsyncpa [#allocation4], 1 }
 0x15b   :  { %628 = vsyncpa [#allocation4 + $0x1], 1 }

</bundles_post_ra>
